<compile_context>
chip_gen: v6e
topology: v6e:2x2x1
jax: 0.10.0
libtpu: 0.0.40
codegen_flags: <defaults>
</compile_context>

<pallas_src>
import jax
import jax.numpy as jnp
from jax import lax
from jax.experimental import pallas as pl
from jax.experimental.pallas import tpu as pltpu

LANE = 128  # TPU vreg lane width


def _round_up(n, m):
    return ((n + m - 1) // m) * m


def _make_kernel(chunk, n_chunks, unroll, vpu_out):
    """Builds the fused-MLP kernel for a fixed (chunk, n_chunks) configuration.

    x_ref : (Din, TB)  bf16   (batch on lanes)
    wN_ref: (out, in)  bf16   (PyTorch nn.Linear layout); w3 is (hid, 1) f32
                              when vpu_out (dout == 1).
    bN_ref: (out, 1)   f32
    o_ref : (Dout, TB) f32
    """

    def mlp_kernel(x_ref, w1_ref, b1_ref, w2_ref, b2_ref, w3_ref, b3_ref, o_ref):
        # Hoist the VMEM-resident weights/biases out of the chunk loop.
        w1 = w1_ref[...]
        b1 = b1_ref[...]
        w2 = w2_ref[...]
        b2 = b2_ref[...]
        w3 = w3_ref[...]
        b3 = b3_ref[...]

        def do_chunk(c0):
            x = x_ref[:, pl.ds(c0, chunk)]

            # layer1: Linear(input_dim -> hidden_dim) + LeakyReLU(0.01)
            h = jnp.dot(w1, x, preferred_element_type=jnp.float32) + b1
            h = jnp.maximum(h, 0.01 * h)

            # layer2: Linear(hidden_dim -> hidden_dim) + LeakyReLU(0.01)
            h = jnp.dot(w2, h.astype(jnp.bfloat16),
                        preferred_element_type=jnp.float32) + b2
            h = jnp.maximum(h, 0.01 * h)

            # output: Linear(hidden_dim -> output_dim)
            if vpu_out:
                # dout == 1: VPU multiply + sublane reduce, f32 (skips a
                # 1/128-row MXU push; VPU/XLU have slack here).
                y = jnp.sum(w3 * h, axis=0, keepdims=True) + b3
            else:
                y = jnp.dot(w3, h.astype(jnp.bfloat16),
                            preferred_element_type=jnp.float32) + b3

            o_ref[:, pl.ds(c0, chunk)] = y.astype(o_ref.dtype)

        if n_chunks == 1:
            do_chunk(0)
        else:
            def body(ci, carry):
                do_chunk(pl.multiple_of(ci * chunk, chunk))
                return carry

            lax.fori_loop(0, n_chunks, body, 0, unroll=unroll)

    return mlp_kernel


def cali_housing_forward(x, params, *, tb=32768, chunk=512):
    """Forward pass of CaliHousingRegressionModel as one Pallas kernel.

    x: (B, input_dim) float32
    params: PyTorch-layout weights: wN (out, in), bN (out,)
    tb: max batch tile (lanes per grid step); multiple of 128.
    chunk: in-kernel lane chunk (multiple of 128).
    """
    w1, b1 = params["w1"], params["b1"]
    w2, b2 = params["w2"], params["b2"]
    w3, b3 = params["w3"], params["b3"]

    B, din = x.shape
    hid = w1.shape[0]
    dout = w3.shape[0]

    assert tb % LANE == 0 and chunk % LANE == 0

    # Lane-aligned padded batch and batch tile.
    bp = _round_up(B, LANE)
    TB = min(tb, bp)
    # Keep >= 2 "parallel" grid steps when the batch allows, so v7x's two
    # TensorCores both get work.  (Harmless on single-TC v5e/v6e.)
    if TB >= bp and bp > LANE:
        TB = _round_up(bp // 2, LANE)
    bp = _round_up(bp, TB)
    n_tiles = bp // TB

    # In-kernel lane chunk: largest value <= `chunk` that divides TB.
    CHUNK = chunk
    while TB % CHUNK != 0:
        CHUNK //= 2
    CHUNK = max(CHUNK, LANE)
    n_chunks = TB // CHUNK
    if n_chunks <= 8:
        unroll = True
    elif n_chunks % 8 == 0:
        unroll = 8
    elif n_chunks % 4 == 0:
        unroll = 4
    else:
        unroll = 1

    vpu_out = (dout == 1)

    # Batch-on-lanes layout: (din, bp) bf16 MXU input.  Single fused
    # transpose + cast + pad pass (no zeros-allocate + scatter).
    xt = jnp.pad(x.astype(jnp.bfloat16).T, ((0, 0), (0, bp - B)))

    w1b = w1.astype(jnp.bfloat16)
    w2b = w2.astype(jnp.bfloat16)
    b1c = b1.reshape(hid, 1).astype(jnp.float32)
    b2c = b2.reshape(hid, 1).astype(jnp.float32)
    b3c = b3.reshape(dout, 1).astype(jnp.float32)
    if vpu_out:
        w3c = w3.reshape(hid, 1).astype(jnp.float32)   # column vector for VPU path
    else:
        w3c = w3.astype(jnp.bfloat16)

    # Weights / biases: whole array as one block, same block index every step
    # (stay VMEM-resident, DMA'd once).
    resident = lambda a: pl.BlockSpec(a.shape, lambda i: (0, 0))

    flops = 2 * bp * (din * hid + hid * hid + hid * dout)
    bytes_accessed = (xt.size * 2
                      + w1b.size * 2 + w2b.size * 2
                      + w3c.size * (4 if vpu_out else 2)
                      + (b1c.size + b2c.size + b3c.size) * 4
                      + dout * bp * 4)

    kernel = _make_kernel(CHUNK, n_chunks, unroll, vpu_out)

    out_t = pl.pallas_call(
        kernel,
        out_shape=jax.ShapeDtypeStruct((dout, bp), jnp.float32),
        grid=(n_tiles,),
        in_specs=[
            pl.BlockSpec((din, TB), lambda i: (0, i)),   # x tile (batch on lanes)
            resident(w1b), resident(b1c),
            resident(w2b), resident(b2c),
            resident(w3c), resident(b3c),
        ],
        out_specs=pl.BlockSpec((dout, TB), lambda i: (0, i)),
        compiler_params=pltpu.CompilerParams(
            dimension_semantics=("parallel",)),
        cost_estimate=pl.CostEstimate(
            flops=flops, transcendentals=0, bytes_accessed=bytes_accessed),
    )(xt, w1b, b1c, w2b, b2c, w3c, b3c)

    # Drop batch padding and un-transpose.
    return out_t[:, :B].T


def init_params(key, input_dim, hidden_dim, output_dim):
    """Deterministic init mimicking PyTorch nn.Linear (U(-1/sqrt(fan_in), ...)).
    Weights are stored in PyTorch layout: (out_features, in_features)."""
    ks = jax.random.split(key, 6)

    def linear(kw, kb, fan_in, fan_out):
        bound = 1.0 / jnp.sqrt(fan_in)
        w = jax.random.uniform(kw, (fan_out, fan_in), jnp.float32, -bound, bound)
        b = jax.random.uniform(kb, (fan_out,), jnp.float32, -bound, bound)
        return w, b

    w1, b1 = linear(ks[0], ks[1], input_dim, hidden_dim)
    w2, b2 = linear(ks[2], ks[3], hidden_dim, hidden_dim)
    w3, b3 = linear(ks[4], ks[5], hidden_dim, output_dim)
    return {"w1": w1, "b1": b1, "w2": w2, "b2": b2, "w3": w3, "b3": b3}


def reference_forward(x, p):
    """Pure-JAX reference using the same numerics recipe as the kernel:
    bf16 MXU inputs + f32 accumulation for layers 1-2, f32 output layer
    when output_dim == 1."""
    bf = lambda a: a.astype(jnp.bfloat16)
    leaky = lambda v: jnp.maximum(v, 0.01 * v)
    h = leaky(jnp.dot(bf(x), bf(p["w1"]).T,
                      preferred_element_type=jnp.float32) + p["b1"])
    h = leaky(jnp.dot(bf(h), bf(p["w2"]).T,
                      preferred_element_type=jnp.float32) + p["b2"])
    if p["w3"].shape[0] == 1:
        return jnp.dot(h, p["w3"].T) + p["b3"]
    return jnp.dot(bf(h), bf(p["w3"]).T,
                   preferred_element_type=jnp.float32) + p["b3"]


if __name__ == "__main__":
    # California housing has 8 features; small synthetic sizes.
    input_dim, hidden_dim, output_dim = 8, 32, 1

    key = jax.random.PRNGKey(0)
    kx, kp = jax.random.split(key)
    params = init_params(kp, input_dim, hidden_dim, output_dim)

    # Primary small check (single tile, single chunk).
    batch = 8
    x = jax.random.normal(kx, (batch, input_dim), jnp.float32)
    out = cali_housing_forward(x, params)
    out = jax.block_until_ready(out)
    ref = reference_forward(x, params)
    assert out.shape == (batch, output_dim)
    max_err = float(jnp.max(jnp.abs(out - ref)))
    assert jnp.allclose(out, ref, atol=2e-3, rtol=2e-3), (
        f"small-batch mismatch vs reference, max abs err = {max_err}")

    # Secondary check exercising the multi-tile grid + in-kernel chunk loop.
    batch2 = 2000
    x2 = jax.random.normal(jax.random.PRNGKey(1), (batch2, input_dim), jnp.float32)
    out2 = cali_housing_forward(x2, params)
    out2 = jax.block_until_ready(out2)
    ref2 = reference_forward(x2, params)
    assert out2.shape == (batch2, output_dim)
    max_err2 = float(jnp.max(jnp.abs(out2 - ref2)))
    assert jnp.allclose(out2, ref2, atol=2e-3, rtol=2e-3), (
        f"tiled-batch mismatch vs reference, max abs err = {max_err2}")

    print("KERNEL_OK")
</pallas_src>

<mosaic_0001>
module attributes {stable_mosaic.version = 11 : i64} {
  func.func @mlp_kernel(%arg0: i32, %arg1: memref<8x128xbf16, #tpu.memory_space<vmem>>, %arg2: memref<32x8xbf16, #tpu.memory_space<vmem>>, %arg3: memref<32x1xf32, #tpu.memory_space<vmem>>, %arg4: memref<32x32xbf16, #tpu.memory_space<vmem>>, %arg5: memref<32x1xf32, #tpu.memory_space<vmem>>, %arg6: memref<32x1xf32, #tpu.memory_space<vmem>>, %arg7: memref<1x1xf32, #tpu.memory_space<vmem>>, %arg8: memref<1x128xf32, #tpu.memory_space<vmem>>) attributes {dimension_semantics = [#tpu.dimension_semantics<parallel>], iteration_bounds = array<i64: 1>, scalar_prefetch = 0 : i64, scratch_operands = 0 : i64, tpu.core_type = #tpu.core_type<tc>, window_params = [{transform_indices = @transform_0, window_bounds = array<i64: 8, 128>}, {pipeline_mode = #tpu.pipeline_mode<synchronous>, transform_indices = @transform_1, window_bounds = array<i64: 32, 8>}, {pipeline_mode = #tpu.pipeline_mode<synchronous>, transform_indices = @transform_2, window_bounds = array<i64: 32, 1>}, {pipeline_mode = #tpu.pipeline_mode<synchronous>, transform_indices = @transform_3, window_bounds = array<i64: 32, 32>}, {pipeline_mode = #tpu.pipeline_mode<synchronous>, transform_indices = @transform_4, window_bounds = array<i64: 32, 1>}, {pipeline_mode = #tpu.pipeline_mode<synchronous>, transform_indices = @transform_5, window_bounds = array<i64: 32, 1>}, {pipeline_mode = #tpu.pipeline_mode<synchronous>, transform_indices = @transform_6, window_bounds = array<i64: 1, 1>}, {transform_indices = @transform_7, window_bounds = array<i64: 1, 128>}]} {
    %c0 = arith.constant 0 : index
    %c0_0 = arith.constant 0 : index
    %0 = vector.load %arg2[%c0, %c0_0] : memref<32x8xbf16, #tpu.memory_space<vmem>>, vector<32x8xbf16>
    %c0_1 = arith.constant 0 : index
    %c0_2 = arith.constant 0 : index
    %1 = vector.load %arg3[%c0_1, %c0_2] : memref<32x1xf32, #tpu.memory_space<vmem>>, vector<32x1xf32>
    %c0_3 = arith.constant 0 : index
    %c0_4 = arith.constant 0 : index
    %2 = vector.load %arg4[%c0_3, %c0_4] : memref<32x32xbf16, #tpu.memory_space<vmem>>, vector<32x32xbf16>
    %c0_5 = arith.constant 0 : index
    %c0_6 = arith.constant 0 : index
    %3 = vector.load %arg5[%c0_5, %c0_6] : memref<32x1xf32, #tpu.memory_space<vmem>>, vector<32x1xf32>
    %c0_7 = arith.constant 0 : index
    %c0_8 = arith.constant 0 : index
    %4 = vector.load %arg6[%c0_7, %c0_8] : memref<32x1xf32, #tpu.memory_space<vmem>>, vector<32x1xf32>
    %c0_9 = arith.constant 0 : index
    %c0_10 = arith.constant 0 : index
    %5 = vector.load %arg7[%c0_9, %c0_10] : memref<1x1xf32, #tpu.memory_space<vmem>>, vector<1x1xf32>
    %c0_11 = arith.constant 0 : index
    %c0_12 = arith.constant 0 : index
    %6 = vector.load %arg1[%c0_11, %c0_12] : memref<8x128xbf16, #tpu.memory_space<vmem>>, vector<8x128xbf16>
    %cst = arith.constant dense<0.000000e+00> : vector<32x128xf32>
    %7 = tpu.matmul %0, %6, %cst {dimension_numbers = #tpu.dot_dimension_numbers<[1], [0], [0], [1], [0, 0, 1, 1], [], []>} : vector<32x8xbf16>, vector<8x128xbf16>, vector<32x128xf32> -> vector<32x128xf32>
    %8 = vector.broadcast %1 : vector<32x1xf32> to vector<32x128xf32>
    %9 = arith.addf %7, %8 : vector<32x128xf32>
    %cst_13 = arith.constant 0.00999999977 : f32
    %10 = vector.broadcast %cst_13 : f32 to vector<32x128xf32>
    %11 = arith.mulf %10, %9 : vector<32x128xf32>
    %12 = arith.maximumf %9, %11 : vector<32x128xf32>
    %13 = arith.truncf %12 : vector<32x128xf32> to vector<32x128xbf16>
    %cst_14 = arith.constant dense<0.000000e+00> : vector<32x128xf32>
    %14 = tpu.matmul %2, %13, %cst_14 {dimension_numbers = #tpu.dot_dimension_numbers<[1], [0], [0], [1], [0, 0, 1, 1], [], []>} : vector<32x32xbf16>, vector<32x128xbf16>, vector<32x128xf32> -> vector<32x128xf32>
    %15 = vector.broadcast %3 : vector<32x1xf32> to vector<32x128xf32>
    %16 = arith.addf %14, %15 : vector<32x128xf32>
    %cst_15 = arith.constant 0.00999999977 : f32
    %17 = vector.broadcast %cst_15 : f32 to vector<32x128xf32>
    %18 = arith.mulf %17, %16 : vector<32x128xf32>
    %19 = arith.maximumf %16, %18 : vector<32x128xf32>
    %20 = vector.broadcast %4 : vector<32x1xf32> to vector<32x128xf32>
    %21 = arith.mulf %20, %19 : vector<32x128xf32>
    %cst_16 = arith.constant dense<0.000000e+00> : vector<128xf32>
    %22 = vector.multi_reduction <add>, %21, %cst_16 [0] : vector<32x128xf32> to vector<128xf32>
    %23 = vector.shape_cast %22 : vector<128xf32> to vector<1x128xf32>
    %24 = vector.broadcast %5 : vector<1x1xf32> to vector<1x128xf32>
    %25 = arith.addf %23, %24 : vector<1x128xf32>
    %c0_17 = arith.constant 0 : index
    %c0_18 = arith.constant 0 : index
    %26 = vector.load %arg8[%c0_17, %c0_18] : memref<1x128xf32, #tpu.memory_space<vmem>>, vector<1x128xf32>
    tpu.vector_store %arg8[%c0_17, %c0_18], %25 {strides = array<i32>} : memref<1x128xf32, #tpu.memory_space<vmem>>, vector<1x128xf32>,
    return
  }
  func.func @transform_0(%arg0: i32) -> (i32, i32) {
    %c0_i32 = arith.constant 0 : i32
    %c0_i32_0 = arith.constant 0 : i32
    return %c0_i32, %arg0 : i32, i32
  }
  func.func @transform_1(%arg0: i32) -> (i32, i32) {
    %c0_i32 = arith.constant 0 : i32
    %c0_i32_0 = arith.constant 0 : i32
    %c0_i32_1 = arith.constant 0 : i32
    return %c0_i32, %c0_i32_0 : i32, i32
  }
  func.func @transform_2(%arg0: i32) -> (i32, i32) {
    %c0_i32 = arith.constant 0 : i32
    %c0_i32_0 = arith.constant 0 : i32
    %c0_i32_1 = arith.constant 0 : i32
    return %c0_i32, %c0_i32_0 : i32, i32
  }
  func.func @transform_3(%arg0: i32) -> (i32, i32) {
    %c0_i32 = arith.constant 0 : i32
    %c0_i32_0 = arith.constant 0 : i32
    %c0_i32_1 = arith.constant 0 : i32
    return %c0_i32, %c0_i32_0 : i32, i32
  }
  func.func @transform_4(%arg0: i32) -> (i32, i32) {
    %c0_i32 = arith.constant 0 : i32
    %c0_i32_0 = arith.constant 0 : i32
    %c0_i32_1 = arith.constant 0 : i32
    return %c0_i32, %c0_i32_0 : i32, i32
  }
  func.func @transform_5(%arg0: i32) -> (i32, i32) {
    %c0_i32 = arith.constant 0 : i32
    %c0_i32_0 = arith.constant 0 : i32
    %c0_i32_1 = arith.constant 0 : i32
    return %c0_i32, %c0_i32_0 : i32, i32
  }
  func.func @transform_6(%arg0: i32) -> (i32, i32) {
    %c0_i32 = arith.constant 0 : i32
    %c0_i32_0 = arith.constant 0 : i32
    %c0_i32_1 = arith.constant 0 : i32
    return %c0_i32, %c0_i32_0 : i32, i32
  }
  func.func @transform_7(%arg0: i32) -> (i32, i32) {
    %c0_i32 = arith.constant 0 : i32
    %c0_i32_0 = arith.constant 0 : i32
    return %c0_i32, %arg0 : i32, i32
  }
}

</mosaic_0001>

<bundles_post_ra>
// kernel: tpu_custom_call.1
= control target key start
LH: loop header
LB: loop body
LE: loop exit
PB: predicated region body
PF: predicated region fallthrough
CT: control target
= control target key end

     0   :  { %s465_s0 = inlined_call_operand.vmem [shape: bf16[8,128], index: 0, kind: input, shape index: {}]   ;;  %s466_s1 = inlined_call_operand.vmem [shape: bf16[32,8], index: 1, kind: input, shape index: {}]   ;;  %s467_s2 = inlined_call_operand.vmem [shape: f32[32,1], index: 2, kind: input, shape index: {}]   ;;  %s468_s3 = inlined_call_operand.vmem [shape: bf16[32,32], index: 3, kind: input, shape index: {}]   ;;  %s469_s4 = inlined_call_operand.vmem [shape: f32[32,1], index: 4, kind: input, shape index: {}]   ;;  %s470_s5 = inlined_call_operand.vmem [shape: f32[32,1], index: 5, kind: input, shape index: {}]   ;;  %s471_s6 = inlined_call_operand.<no memory space> [shape: f32[1,1], index: 6, kind: input, shape index: {}]   ;;  %s472_s7 = inlined_call_operand.hbm [shape: f32[1,128], index: 7, kind: output, shape index: {}]  }
   0x1   :  { %v12_v0 = vstv %s471_s6 }
   0x2   :  { %13 = vst [vmem:[#allocation2] sm:$0x1] %v12_v0 }
   0x3   :  { %v51_v1 = vld [vmem:[%s465_s0] sm:$0xf]  ;;  %vm89_vm0 = vcmask 1043456   ;;  %vm82_vm1 = vcmask 64512   ;;  %v339_v4 = vld [vmem:[%s466_s1 + $0x8] sm:$0xff]   ;;  %v36_v5 = vld [vmem:[%s467_s2 + $0x10] sm:$0xff] }
   0x4   :  { %v338_v2 = vld [vmem:[%s466_s1] sm:$0xff]   ;;  %333 = vmatprep.subr.msk.bf16.mxu0 %vm89_vm0, %v51_v1  ;;  %v91_v3 = vsel %vm89_vm0, %v51_v1, 0  ;;  %v364_v6 = vmov 0   ;;  %v37_v8 = vld [vmem:[%s467_s2 + $0x18] sm:$0xff]  ;;  %v35_v9 = vld [vmem:[%s467_s2 + $0x8] sm:$0xff] }
   0x5   :  { %320 = vmatpush3.bf16.msra.mxu0 %v91_v3  ;;  %321 = vmatprep.mubr.msk.bf16.mxu0 %vm82_vm1, %v338_v2  ;;  %v34_v7 = vld [vmem:[%s467_s2] sm:$0xff] }
   0x6   :  { %336 = vset.pattern.permute.xlu0 %v364_v6  ;;  %337 = vset.pattern.permute.xlu1 %v364_v6 }
   0x7   :  { %64 = vperm.xlu0 %336, %v36_v5   ;;  %54 = vperm.xlu1 %337, %v34_v7  }
   0x8   :  { %322 = vmatmul.mubr.msk.bf16.vlgmr.msra.gmra.mxu0 %vm82_vm1, %v339_v4 }
   0xb   :  { %69 = vperm.xlu0 %336, %v37_v8   ;;  %59 = vperm.xlu1 %337, %v35_v9  }
   0xc   :  { %14 = vsyncpa [#allocation4], 0  ;;  %v42_v10 = vld [vmem:[%s469_s4] sm:$0xff]  ;;  %v43_v11 = vld [vmem:[%s469_s4 + $0x8] sm:$0xff]  ;;  %vm182_vm2 = vcmask 261120   ;;  %v284_v9 = vlaneseq }
   0xd   :  { %v44_v12 = vld [vmem:[%s469_s4 + $0x10] sm:$0xff]  ;;  %v45_v13 = vld [vmem:[%s469_s4 + $0x18] sm:$0xff]  ;;  %v46_v14 = vld [vmem:[%s470_s5] sm:$0xff] }
   0xe   :  { %v47_v15 = vld [vmem:[%s470_s5 + $0x8] sm:$0xff]  ;;  %v48_v16 = vld [vmem:[%s470_s5 + $0x10] sm:$0xff]  ;;  %v49_v17 = vld [vmem:[%s470_s5 + $0x18] sm:$0xff] }
   0xf   :  { %154 = vperm.xlu0 %336, %v42_v10   ;;  %159 = vperm.xlu1 %337, %v43_v11   ;;  %v50_v18 = vld [vmem:[#allocation2] sm:$0x1]  ;;  %v341_v42 = vld [vmem:[%s468_s3 + $0x8] sm:$0xff]  }
  0x10   :  { %v340_v19 = vld [vmem:[%s468_s3] sm:$0xff]   ;;  %s365_s3 = smov [#allocation3]  }
  0x11   :  { %329 = vmatprep.mubr.msk.bf16.mxu1 %vm182_vm2, %v340_v19  ;;  %s296_s8 = sshll.u32 %s365_s3, 4  ;;  %s297_s8 = int_to_ptr.vmem [resolvable:$true] %s296_s8 }
  0x12   :  { %s342_s6 = scalar_lea.vmem %s297_s8, 16  ;;  %s346_s9 = scalar_lea.vmem %s297_s8, 32 }
  0x13   :  { %164 = vperm.xlu0 %336, %v44_v12   ;;  %169 = vperm.xlu1 %337, %v45_v13   ;;  %v285_v12 = vshrl.u32 %v284_v9, 7  ;;  %p343_p0 = scmp.ne.s32.totalorder %s297_s8, %s342_s6  ;;  %p347_p1 = scmp.lt.s32.totalorder %s297_s8, %s297_s8 }
  0x14   :  { %p348_p2 = scmp.lt.s32.totalorder %s346_s9, %s342_s6 }
  0x16   :  { %p349_p3 = por %p348_p2, %p347_p1 }
  0x17   :  { %248 = vperm.xlu0 %336, %v46_v14   ;;  %253 = vperm.xlu1 %337, %v47_v15   ;;  %v286_v15 = vsub.s32 0, %v285_v12 }
  0x18   :  { %p350_p4 = pnand %p349_p3, %p343_p0 }
  0x1b   :  { %258 = vperm.xlu0 %336, %v48_v16   ;;  %263 = vperm.xlu1 %337, %v49_v17  }
  0x1f   :  { %281 = vperm.xlu0 %336, %v50_v18  }
  0x82   :  { %v65_v20 = vpop.permute.xlu0 %64  ;;  %v55_v21 = vpop.permute.xlu1 %54 }
  0x86   :  { %v70_v26 = vpop.permute.xlu0 %69  ;;  %v60_v30 = vpop.permute.xlu1 %59 }
  0x8a   :  { %v155_v43 = vpop.permute.xlu0 %154  ;;  %v160_v44 = vpop.permute.xlu1 %159 }
  0x8e   :  { %v165_v46 = vpop.permute.xlu0 %164  ;;  %v170_v50 = vpop.permute.xlu1 %169 }
  0x92   :  { %v249_v57 = vpop.permute.xlu0 %248  ;;  %v254_v61 = vpop.permute.xlu1 %253 }
  0x96   :  { %v259_v3 = vpop.permute.xlu0 %258  ;;  %v264_v6 = vpop.permute.xlu1 %263 }
  0x9a   :  { %v282_v17 = vpop.permute.xlu0 %281 }
  0x9b   :  { %v287_v19 = vrot.slane %v282_v17, %v286_v15 }
  0xc8   :  { %v323_v22 = vpop.f32.mrf.mxu0 }
  0xc9   :  { %v136_v23 = vadd.f32 %v323_v22, %v65_v20 }
  0xca   :  { %v127_v24 = vpop.f32.mrf.mxu0 }
  0xcb   :  { %v128_v25 = vadd.f32 %v127_v24, %v55_v21  ;;  %v144_v28 = vmul.f32 0.01, %v136_v23 }
  0xcc   :  { %v324_v27 = vpop.f32.mrf.mxu0 }
  0xcd   :  { %v139_v29 = vadd.f32 %v324_v27, %v70_v26  ;;  %v142_v32 = vmul.f32 0.01, %v128_v25  ;;  %v148_v35 = vmax.f32 %v136_v23, %v144_v28 }
  0xce   :  { %v130_v31 = vpop.f32.mrf.mxu0 }
  0xcf   :  { %v145_v33 = vmul.f32 0.01, %v139_v29  ;;  %v131_v34 = vadd.f32 %v130_v31, %v60_v30  ;;  %v146_v38 = vmax.f32 %v128_v25, %v142_v32 }
  0xd1   :  { %v149_v36 = vmax.f32 %v139_v29, %v145_v33  ;;  %v143_v37 = vmul.f32 0.01, %v131_v34 }
  0xd3   :  { %v147_v39 = vmax.f32 %v131_v34, %v143_v37  ;;  %v151_v40 = vpack.c.bf16 %v149_v36, %v148_v35 }
  0xd5   :  { %325 = vmatprep.subr.bf16.mxu1 %v151_v40  ;;  %v150_v41 = vpack.c.bf16 %v147_v39, %v146_v38 }
  0xd6   :  { %326 = vmatpush3.bf16.msra.mxu1 %v151_v40 }
  0xd7   :  { %327 = vmatprep.subr.bf16.mxu1 %v150_v41 }
  0xda   :  { %328 = vmatpush3.bf16.msra.mxu1 %v150_v41 }
  0xdd   :  { %330 = vmatmul.mubr.msk.bf16.vlgmr.msra.gmra.mxu1 %vm182_vm2, %v341_v42 }
 0x19d   :  { %v331_v45 = vpop.f32.mrf.mxu1 }
 0x19e   :  { %v232_v48 = vadd.f32 %v331_v45, %v165_v46 }
 0x19f   :  { %v223_v47 = vpop.f32.mrf.mxu1 }
 0x1a0   :  { %v224_v49 = vadd.f32 %v223_v47, %v155_v43  ;;  %v240_v55 = vmul.f32 0.01, %v232_v48 }
 0x1a1   :  { %v332_v51 = vpop.f32.mrf.mxu1 }
 0x1a2   :  { %v238_v52 = vmul.f32 0.01, %v224_v49  ;;  %v235_v53 = vadd.f32 %v332_v51, %v170_v50  ;;  %v244_v62 = vmax.f32 %v232_v48, %v240_v55 }
 0x1a3   :  { %v226_v54 = vpop.f32.mrf.mxu1 }
 0x1a4   :  { %v227_v56 = vadd.f32 %v226_v54, %v160_v44  ;;  %v242_v58 = vmax.f32 %v224_v49, %v238_v52  ;;  %v241_v59 = vmul.f32 0.01, %v235_v53  ;;  %v268_v4 = vmul.f32 %v259_v3, %v244_v62 }
 0x1a6   :  { %v239_v60 = vmul.f32 0.01, %v227_v56  ;;  %v266_v0 = vmul.f32 %v249_v57, %v242_v58  ;;  %v245_v1 = vmax.f32 %v235_v53, %v241_v59 }
 0x1a8   :  { %v243_v63 = vmax.f32 %v227_v56, %v239_v60  ;;  %v269_v7 = vmul.f32 %v264_v6, %v245_v1 }
 0x1aa   :  { %v267_v2 = vmul.f32 %v254_v61, %v243_v63 }
 0x1ac   :  { %v270_v5 = vadd.f32 %v267_v2, %v266_v0 }
 0x1ae   :  { %v271_v8 = vadd.f32 %v270_v5, %v268_v4 }
 0x1b0   :  { %v272_v10 = vadd.f32 %v271_v8, %v269_v7 }
 0x1b2   :  { %v273_v11 = vrot.slane %v272_v10, 4 }
 0x1b4   :  { %v274_v13 = vadd.f32 %v273_v11, %v272_v10 }
 0x1b6   :  { %v275_v14 = vrot.slane %v274_v13, 2 }
 0x1b8   :  { %v276_v16 = vadd.f32 %v275_v14, %v274_v13 }
 0x1ba   :  { %v277_v18 = vrot.slane %v276_v16, 1 }
 0x1bc   :  { %v278_v20 = vadd.f32 %v277_v18, %v276_v16 }
 0x1be   :  { %v288_v21 = vadd.f32 %v287_v19, %v278_v20 }
 0x1c0   :  { %289 = vst [vmem:[#allocation3] sm:$0x1] %v288_v21 }
 0x1c1   :  { %353 = shalt.err (!%p350_p4)
}
 0x1c2   :  { %299 = dma.vmem_to_hbm [thread:$0]  %s297_s8, 16, %s472_s7, [#allocation4]  }
 0x1c3   :  { %362 = dma.done.wait [#allocation4], 16  }
 0x1c4   :  { %363 = vsyncadd [#allocation4], 4294967280 }
 0x1c5   :  { %303 = vsyncpa [#allocation4], 1 }

</bundles_post_ra>
